<compile_context>
chip_gen: v7x
topology: tpu7x:2x2x1
jax: 0.10.0
libtpu: 0.0.40
codegen_flags: <defaults>
</compile_context>

<pallas_src>
import math

import numpy as np

import jax
import jax.numpy as jnp
from jax import lax
from jax.experimental import pallas as pl
from jax.experimental.pallas import tpu as pltpu

# ---- module hyper-parameters (small, consistent with the PyTorch module) ----
N_SITE = 8                      # sequence length L
NUM_CLASSES = 4                 # one-hot width C
CLS_PAD = 8                     # one-hot width padded to 8 (extra columns never fire)
EMBED_DIM = 32                  # E
NUM_HEADS = 4                   # H
HEAD_DIM = EMBED_DIM // NUM_HEADS   # D = 8
LN_EPS = 1e-5

BATCH_BLOCK = 2                 # batch elements processed per grid step
ROWS_BLK = BATCH_BLOCK * N_SITE     # 16 (batch, seq) rows per block
HCLS = NUM_HEADS * CLS_PAD          # 32 expanded one-hot width (head-major classes)
HROWS = NUM_HEADS * ROWS_BLK        # 64 head-major rows per block

# Block-diagonal additive mask over (head, batch) blocks of size L — trace-time constant.
_blk = np.arange(HROWS) // N_SITE
_MASK_NP = np.where(_blk[:, None] == _blk[None, :], 0.0, -1e30).astype(np.float32)


# --------------------------- Pallas kernel ----------------------------------
def _self_attn_kernel(coltgt_ref,   # (HROWS, 1) int32: head*CLS_PAD + token, (head, batch, seq) row order
                      wpack_ref,    # (4*HCLS, E) f32: [Wq_exp | Wk_exp | WvWo_exp | Wemb+bo] (biases/scale folded)
                      mask_ref,     # (HROWS, HROWS) f32 additive block-diagonal mask
                      out_ref):     # (ROWS_BLK, E)
    E = EMBED_DIM

    # Expanded one-hot in (head, batch, seq) row order — one iota compare, no shuffles.
    lanes = lax.broadcasted_iota(jnp.int32, (HROWS, HCLS), 1)
    onehot = (lanes == coltgt_ref[...]).astype(jnp.float32)                               # (64, 32)

    # Q / K for all heads & batch rows (embedding, biases and 1/sqrt(D) folded in).
    q_r = jnp.dot(onehot, wpack_ref[0 * HCLS:1 * HCLS, :],
                  preferred_element_type=jnp.float32)                                     # (64, 32)
    k_r = jnp.dot(onehot, wpack_ref[1 * HCLS:2 * HCLS, :],
                  preferred_element_type=jnp.float32)                                     # (64, 32)

    # one score matmul + one softmax for all heads / batch elements (constant mask).
    s = lax.dot_general(q_r, k_r, (((1,), (1,)), ((), ())),
                        preferred_element_type=jnp.float32) + mask_ref[...]               # (64, 64)
    m = jnp.max(s, axis=-1, keepdims=True)
    p = jnp.exp(s - m)
    denom = jnp.sum(p, axis=-1, keepdims=True)
    inv = pl.reciprocal(denom, approx=True)
    inv = inv * (2.0 - denom * inv)            # one Newton step -> f32-accurate softmax
    p = p * inv

    # P @ one-hot puts the probabilities back on (head, class) columns; the folded
    # (Wv·Wo) block then yields each head's contribution to attn_out @ Wo directly.
    pv = jnp.dot(p, onehot, preferred_element_type=jnp.float32)                           # (64, 32)
    vo = jnp.dot(pv, wpack_ref[2 * HCLS:3 * HCLS, :],
                 preferred_element_type=jnp.float32)                                      # (64, 32)

    # residual embedding (+ folded out-proj bias) from the head-0 one-hot rows.
    emb = jnp.dot(onehot[0:ROWS_BLK, :], wpack_ref[3 * HCLS:4 * HCLS, :],
                  preferred_element_type=jnp.float32)                                     # (16, 32)

    # y = attn_out + bo + emb : head sum is 4 aligned sublane slices, no concatenates.
    y = emb
    for h in range(NUM_HEADS):
        y = y + vo[h * ROWS_BLK:(h + 1) * ROWS_BLK, :]                                    # (16, 32)

    # LayerNorm per batch element over its (L, E) slab (no affine), two-pass variance,
    # fused reductions and a single coalesced store.
    inv_n = 1.0 / float(N_SITE * E)
    sumblk = jnp.where(mask_ref[0:ROWS_BLK, 0:ROWS_BLK] < -1.0, 0.0, inv_n)               # (16, 16)
    mean_vec = jnp.sum(jnp.dot(sumblk, y, preferred_element_type=jnp.float32),
                       axis=-1, keepdims=True)                                            # (16, 1)
    d = y - mean_vec
    var_vec = jnp.sum(jnp.dot(sumblk, d * d, preferred_element_type=jnp.float32),
                      axis=-1, keepdims=True)                                             # (16, 1)
    out_ref[...] = d * lax.rsqrt(var_vec + LN_EPS)


# --------------------------- parameter packing --------------------------------
def _pack_params(params):
    """Fold embedding, all biases, softmax scale and Wo into one (4*HCLS, E) slab."""
    (wemb_t, bemb, wq_t, bq, wk_t, bk, wv_t, bv, wo_t, bo) = params
    E, H, D, C = EMBED_DIM, NUM_HEADS, HEAD_DIM, NUM_CLASSES
    scale = 1.0 / math.sqrt(D)

    We = wemb_t + bemb                            # (C, E)  embedding with bias folded

    q_all = (We @ wq_t + bq) * scale              # (C, E)  scale folded into Q
    k_all = We @ wk_t + bk                        # (C, E)
    v_all = We @ wv_t + bv                        # (C, E)

    def to_head_rows(x):                          # (C, E) -> (H*CLS_PAD, D), rows = (head, class)
        xh = x.reshape(C, H, D).transpose(1, 0, 2)                 # (H, C, D)
        xh = jnp.pad(xh, ((0, 0), (0, CLS_PAD - C), (0, 0)))       # (H, CLS_PAD, D)
        return xh.reshape(H * CLS_PAD, D)

    def pad_lanes(x):                             # pad last dim to E with zeros
        return jnp.pad(x, ((0, 0), (0, E - x.shape[1])))

    wq_exp = pad_lanes(to_head_rows(q_all))                        # (32, 32)
    wk_exp = pad_lanes(to_head_rows(k_all))                        # (32, 32)

    # fold Wv and Wo: row (h, c) -> v_all[c, hD:(h+1)D] @ wo_t[hD:(h+1)D, :]
    v_h = v_all.reshape(C, H, D).transpose(1, 0, 2)                # (H, C, D)
    wo_h = wo_t.reshape(H, D, E)                                   # (H, D, E)
    wvo = jnp.einsum('hcd,hde->hce', v_h, wo_h)                    # (H, C, E)
    wvo_exp = jnp.pad(wvo, ((0, 0), (0, CLS_PAD - C), (0, 0))).reshape(H * CLS_PAD, E)   # (32, 32)

    # residual embedding with the out-proj bias folded (one-hot rows sum to 1)
    we_bo = jnp.pad(We + bo, ((0, CLS_PAD - C), (0, 0)))           # (8, 32)
    we_bo_exp = jnp.pad(we_bo, ((0, H * CLS_PAD - CLS_PAD), (0, 0)))   # (32, 32)

    return jnp.concatenate([wq_exp, wk_exp, wvo_exp, we_bo_exp], axis=0).astype(jnp.float32)   # (128, 32)


# ------------------------------ wrapper --------------------------------------
@jax.jit
def self_attn_block(tokens, params):
    """tokens: (B, L) int ; returns (B, L, E) float32."""
    B, L = tokens.shape
    assert L == N_SITE
    E = EMBED_DIM

    wpack = _pack_params(params)                      # (128, 32)
    mask = jnp.asarray(_MASK_NP)                      # (64, 64)

    G = -(-B // BATCH_BLOCK)                          # grid steps (blocks of BATCH_BLOCK)
    B_pad = G * BATCH_BLOCK

    tok = jnp.pad(tokens.astype(jnp.int32), ((0, B_pad - B), (0, 0)))        # (B_pad, L)
    tok = tok.reshape(G, BATCH_BLOCK, L)
    coltgt = (tok[:, None, :, :] +
              (jnp.arange(NUM_HEADS, dtype=jnp.int32) * CLS_PAD)[None, :, None, None])
    coltgt = coltgt.reshape(G * HROWS, 1)             # head-major rows per block

    out = pl.pallas_call(
        _self_attn_kernel,
        out_shape=jax.ShapeDtypeStruct((G * ROWS_BLK, E), jnp.float32),
        grid=(G,),
        in_specs=[
            pl.BlockSpec((HROWS, 1), lambda i: (i, 0)),
            pl.BlockSpec((4 * HCLS, E), lambda i: (0, 0)),      # constant block -> fetched once
            pl.BlockSpec((HROWS, HROWS), lambda i: (0, 0)),     # constant block -> fetched once
        ],
        out_specs=pl.BlockSpec((ROWS_BLK, E), lambda i: (i, 0)),
        compiler_params=pltpu.CompilerParams(dimension_semantics=("parallel",)),
    )(coltgt, wpack, mask)

    return out[:B * L].reshape(B, L, E)


# ------------------------- pure-JAX reference ---------------------------------
def self_attn_block_ref(tokens, params):
    (wemb_t, bemb, wq_t, bq, wk_t, bk, wv_t, bv, wo_t, bo) = params
    onehot = jax.nn.one_hot(tokens, NUM_CLASSES, dtype=jnp.float32)
    emb = onehot @ wemb_t + bemb                               # (B, L, E)
    q = emb @ wq_t + bq
    k = emb @ wk_t + bk
    v = emb @ wv_t + bv
    B, L, E = emb.shape
    qh = q.reshape(B, L, NUM_HEADS, HEAD_DIM)
    kh = k.reshape(B, L, NUM_HEADS, HEAD_DIM)
    vh = v.reshape(B, L, NUM_HEADS, HEAD_DIM)
    s = jnp.einsum('blhd,bmhd->bhlm', qh, kh) / math.sqrt(HEAD_DIM)
    p = jax.nn.softmax(s, axis=-1)
    o = jnp.einsum('bhlm,bmhd->blhd', p, vh).reshape(B, L, E)
    attn_out = o @ wo_t + bo
    y = attn_out + emb
    mean = jnp.mean(y, axis=(1, 2), keepdims=True)
    var = jnp.mean((y - mean) ** 2, axis=(1, 2), keepdims=True)
    return (y - mean) / jnp.sqrt(var + LN_EPS)


# ---------------------------- param init --------------------------------------
def init_params(key):
    ks = jax.random.split(key, 10)
    s = 0.1
    wemb_t = s * jax.random.normal(ks[0], (NUM_CLASSES, EMBED_DIM), jnp.float32)
    bemb = s * jax.random.normal(ks[1], (1, EMBED_DIM), jnp.float32)
    wq_t = s * jax.random.normal(ks[2], (EMBED_DIM, EMBED_DIM), jnp.float32)
    bq = s * jax.random.normal(ks[3], (1, EMBED_DIM), jnp.float32)
    wk_t = s * jax.random.normal(ks[4], (EMBED_DIM, EMBED_DIM), jnp.float32)
    bk = s * jax.random.normal(ks[5], (1, EMBED_DIM), jnp.float32)
    wv_t = s * jax.random.normal(ks[6], (EMBED_DIM, EMBED_DIM), jnp.float32)
    bv = s * jax.random.normal(ks[7], (1, EMBED_DIM), jnp.float32)
    wo_t = s * jax.random.normal(ks[8], (EMBED_DIM, EMBED_DIM), jnp.float32)
    bo = s * jax.random.normal(ks[9], (1, EMBED_DIM), jnp.float32)
    return (wemb_t, bemb, wq_t, bq, wk_t, bk, wv_t, bv, wo_t, bo)


if __name__ == "__main__":
    key = jax.random.PRNGKey(0)
    k_tok, k_tok2 = jax.random.split(key)
    params = init_params(jax.random.PRNGKey(42))

    # primary small example: batch=2, seq=8
    tokens = jax.random.randint(k_tok, (2, N_SITE), 0, NUM_CLASSES, dtype=jnp.int32)
    out = jax.block_until_ready(self_attn_block(tokens, params))
    ref = self_attn_block_ref(tokens, params)
    assert out.shape == (2, N_SITE, EMBED_DIM)
    assert bool(jnp.all(jnp.isfinite(out)))
    assert bool(jnp.allclose(out, ref, atol=1e-4, rtol=1e-4)), "mismatch vs reference (B=2)"

    # larger batch exercises the parallel grid axis (multiple batch blocks + padding)
    tokens5 = jax.random.randint(k_tok2, (5, N_SITE), 0, NUM_CLASSES, dtype=jnp.int32)
    out5 = jax.block_until_ready(self_attn_block(tokens5, params))
    ref5 = self_attn_block_ref(tokens5, params)
    assert out5.shape == (5, N_SITE, EMBED_DIM)
    assert bool(jnp.allclose(out5, ref5, atol=1e-4, rtol=1e-4)), "mismatch vs reference (B=5)"

    print("KERNEL_OK")
</pallas_src>

<mosaic_0001>
module attributes {stable_mosaic.version = 11 : i64} {
  func.func @_self_attn_kernel(%arg0: i32, %arg1: memref<64x1xi32, #tpu.memory_space<vmem>>, %arg2: memref<128x32xf32, #tpu.memory_space<vmem>>, %arg3: memref<64x64xf32, #tpu.memory_space<vmem>>, %arg4: memref<16x32xf32, #tpu.memory_space<vmem>>) attributes {dimension_semantics = [#tpu.dimension_semantics<parallel>], iteration_bounds = array<i64: 1>, scalar_prefetch = 0 : i64, scratch_operands = 0 : i64, tpu.core_type = #tpu.core_type<tc>, window_params = [{transform_indices = @transform_0, window_bounds = array<i64: 64, 1>}, {pipeline_mode = #tpu.pipeline_mode<synchronous>, transform_indices = @transform_1, window_bounds = array<i64: 128, 32>}, {pipeline_mode = #tpu.pipeline_mode<synchronous>, transform_indices = @transform_2, window_bounds = array<i64: 64, 64>}, {transform_indices = @transform_3, window_bounds = array<i64: 16, 32>}]} {
    %0 = tpu.iota {dimensions = array<i32: 1>} : vector<64x32xi32>
    %c0 = arith.constant 0 : index
    %c0_0 = arith.constant 0 : index
    %1 = vector.load %arg1[%c0, %c0_0] : memref<64x1xi32, #tpu.memory_space<vmem>>, vector<64x1xi32>
    %2 = vector.broadcast %1 : vector<64x1xi32> to vector<64x32xi32>
    %3 = arith.cmpi eq, %0, %2 : vector<64x32xi32>
    %4 = arith.extui %3 : vector<64x32xi1> to vector<64x32xi32>
    %5 = arith.sitofp %4 : vector<64x32xi32> to vector<64x32xf32>
    %c0_1 = arith.constant 0 : index
    %c0_2 = arith.constant 0 : index
    %6 = vector.load %arg2[%c0_1, %c0_2] : memref<128x32xf32, #tpu.memory_space<vmem>>, vector<32x32xf32>
    %cst = arith.constant dense<0.000000e+00> : vector<64x32xf32>
    %7 = tpu.matmul %5, %6, %cst {dimension_numbers = #tpu.dot_dimension_numbers<[1], [0], [0], [1], [0, 0, 1, 1], [], []>} : vector<64x32xf32>, vector<32x32xf32>, vector<64x32xf32> -> vector<64x32xf32>
    %c32 = arith.constant 32 : index
    %c0_3 = arith.constant 0 : index
    %8 = vector.load %arg2[%c32, %c0_3] : memref<128x32xf32, #tpu.memory_space<vmem>>, vector<32x32xf32>
    %cst_4 = arith.constant dense<0.000000e+00> : vector<64x32xf32>
    %9 = tpu.matmul %5, %8, %cst_4 {dimension_numbers = #tpu.dot_dimension_numbers<[1], [0], [0], [1], [0, 0, 1, 1], [], []>} : vector<64x32xf32>, vector<32x32xf32>, vector<64x32xf32> -> vector<64x32xf32>
    %cst_5 = arith.constant dense<0.000000e+00> : vector<64x64xf32>
    %10 = tpu.matmul %7, %9, %cst_5 {dimension_numbers = #tpu.dot_dimension_numbers<[1], [1], [0], [0], [0, 0, 1, 0], [], []>} : vector<64x32xf32>, vector<64x32xf32>, vector<64x64xf32> -> vector<64x64xf32>
    %c0_6 = arith.constant 0 : index
    %c0_7 = arith.constant 0 : index
    %11 = vector.load %arg3[%c0_6, %c0_7] : memref<64x64xf32, #tpu.memory_space<vmem>>, vector<64x64xf32>
    %12 = arith.addf %10, %11 : vector<64x64xf32>
    %cst_8 = arith.constant dense<0xFF800000> : vector<64xf32>
    %13 = vector.multi_reduction <maximumf>, %12, %cst_8 [1] : vector<64x64xf32> to vector<64xf32>
    %14 = vector.shape_cast %13 : vector<64xf32> to vector<64x1xf32>
    %15 = vector.broadcast %14 : vector<64x1xf32> to vector<64x64xf32>
    %16 = arith.subf %12, %15 : vector<64x64xf32>
    %17 = math.exp %16 : vector<64x64xf32>
    %cst_9 = arith.constant dense<0.000000e+00> : vector<64xf32>
    %18 = vector.multi_reduction <add>, %17, %cst_9 [1] : vector<64x64xf32> to vector<64xf32>
    %19 = vector.shape_cast %18 : vector<64xf32> to vector<64x1xf32>
    %20 = tpu.reciprocal %19 {approx = true} : vector<64x1xf32> -> vector<64x1xf32>
    %21 = arith.mulf %19, %20 : vector<64x1xf32>
    %cst_10 = arith.constant 2.000000e+00 : f32
    %22 = vector.broadcast %cst_10 : f32 to vector<64x1xf32>
    %23 = arith.subf %22, %21 : vector<64x1xf32>
    %24 = arith.mulf %20, %23 : vector<64x1xf32>
    %25 = vector.broadcast %24 : vector<64x1xf32> to vector<64x64xf32>
    %26 = arith.mulf %17, %25 : vector<64x64xf32>
    %cst_11 = arith.constant dense<0.000000e+00> : vector<64x32xf32>
    %27 = tpu.matmul %26, %5, %cst_11 {dimension_numbers = #tpu.dot_dimension_numbers<[1], [0], [0], [1], [0, 0, 1, 1], [], []>} : vector<64x64xf32>, vector<64x32xf32>, vector<64x32xf32> -> vector<64x32xf32>
    %c64 = arith.constant 64 : index
    %c0_12 = arith.constant 0 : index
    %28 = vector.load %arg2[%c64, %c0_12] : memref<128x32xf32, #tpu.memory_space<vmem>>, vector<32x32xf32>
    %cst_13 = arith.constant dense<0.000000e+00> : vector<64x32xf32>
    %29 = tpu.matmul %27, %28, %cst_13 {dimension_numbers = #tpu.dot_dimension_numbers<[1], [0], [0], [1], [0, 0, 1, 1], [], []>} : vector<64x32xf32>, vector<32x32xf32>, vector<64x32xf32> -> vector<64x32xf32>
    %30 = vector.extract_strided_slice %5 {offsets = [0, 0], sizes = [16, 32], strides = [1, 1]} : vector<64x32xf32> to vector<16x32xf32>
    %c96 = arith.constant 96 : index
    %c0_14 = arith.constant 0 : index
    %31 = vector.load %arg2[%c96, %c0_14] : memref<128x32xf32, #tpu.memory_space<vmem>>, vector<32x32xf32>
    %cst_15 = arith.constant dense<0.000000e+00> : vector<16x32xf32>
    %32 = tpu.matmul %30, %31, %cst_15 {dimension_numbers = #tpu.dot_dimension_numbers<[1], [0], [0], [1], [0, 0, 1, 1], [], []>} : vector<16x32xf32>, vector<32x32xf32>, vector<16x32xf32> -> vector<16x32xf32>
    %33 = vector.extract_strided_slice %29 {offsets = [0, 0], sizes = [16, 32], strides = [1, 1]} : vector<64x32xf32> to vector<16x32xf32>
    %34 = arith.addf %32, %33 : vector<16x32xf32>
    %35 = vector.extract_strided_slice %29 {offsets = [16, 0], sizes = [16, 32], strides = [1, 1]} : vector<64x32xf32> to vector<16x32xf32>
    %36 = arith.addf %34, %35 : vector<16x32xf32>
    %37 = vector.extract_strided_slice %29 {offsets = [32, 0], sizes = [16, 32], strides = [1, 1]} : vector<64x32xf32> to vector<16x32xf32>
    %38 = arith.addf %36, %37 : vector<16x32xf32>
    %39 = vector.extract_strided_slice %29 {offsets = [48, 0], sizes = [16, 32], strides = [1, 1]} : vector<64x32xf32> to vector<16x32xf32>
    %40 = arith.addf %38, %39 : vector<16x32xf32>
    %c0_16 = arith.constant 0 : index
    %c0_17 = arith.constant 0 : index
    %41 = vector.load %arg3[%c0_16, %c0_17] : memref<64x64xf32, #tpu.memory_space<vmem>>, vector<16x16xf32>
    %cst_18 = arith.constant -1.000000e+00 : f32
    %42 = vector.broadcast %cst_18 : f32 to vector<16x16xf32>
    %43 = arith.cmpf olt, %41, %42 : vector<16x16xf32>
    %cst_19 = arith.constant 0.000000e+00 : f32
    %cst_20 = arith.constant 3.906250e-03 : f32
    %44 = vector.broadcast %cst_19 : f32 to vector<16x16xf32>
    %45 = vector.broadcast %cst_20 : f32 to vector<16x16xf32>
    %46 = arith.select %43, %44, %45 : vector<16x16xi1>, vector<16x16xf32>
    %cst_21 = arith.constant dense<0.000000e+00> : vector<16x32xf32>
    %47 = tpu.matmul %46, %40, %cst_21 {dimension_numbers = #tpu.dot_dimension_numbers<[1], [0], [0], [1], [0, 0, 1, 1], [], []>} : vector<16x16xf32>, vector<16x32xf32>, vector<16x32xf32> -> vector<16x32xf32>
    %cst_22 = arith.constant dense<0.000000e+00> : vector<16xf32>
    %48 = vector.multi_reduction <add>, %47, %cst_22 [1] : vector<16x32xf32> to vector<16xf32>
    %49 = vector.shape_cast %48 : vector<16xf32> to vector<16x1xf32>
    %50 = vector.broadcast %49 : vector<16x1xf32> to vector<16x32xf32>
    %51 = arith.subf %40, %50 : vector<16x32xf32>
    %52 = arith.mulf %51, %51 : vector<16x32xf32>
    %cst_23 = arith.constant dense<0.000000e+00> : vector<16x32xf32>
    %53 = tpu.matmul %46, %52, %cst_23 {dimension_numbers = #tpu.dot_dimension_numbers<[1], [0], [0], [1], [0, 0, 1, 1], [], []>} : vector<16x16xf32>, vector<16x32xf32>, vector<16x32xf32> -> vector<16x32xf32>
    %cst_24 = arith.constant dense<0.000000e+00> : vector<16xf32>
    %54 = vector.multi_reduction <add>, %53, %cst_24 [1] : vector<16x32xf32> to vector<16xf32>
    %55 = vector.shape_cast %54 : vector<16xf32> to vector<16x1xf32>
    %cst_25 = arith.constant 9.99999974E-6 : f32
    %56 = vector.broadcast %cst_25 : f32 to vector<16x1xf32>
    %57 = arith.addf %55, %56 : vector<16x1xf32>
    %58 = math.rsqrt %57 : vector<16x1xf32>
    %59 = vector.broadcast %58 : vector<16x1xf32> to vector<16x32xf32>
    %60 = arith.mulf %51, %59 : vector<16x32xf32>
    %c0_26 = arith.constant 0 : index
    %c0_27 = arith.constant 0 : index
    %61 = vector.load %arg4[%c0_26, %c0_27] : memref<16x32xf32, #tpu.memory_space<vmem>>, vector<16x32xf32>
    tpu.vector_store %arg4[%c0_26, %c0_27], %60 {strides = array<i32>} : memref<16x32xf32, #tpu.memory_space<vmem>>, vector<16x32xf32>,
    return
  }
  func.func @transform_0(%arg0: i32) -> (i32, i32) {
    %c0_i32 = arith.constant 0 : i32
    %c0_i32_0 = arith.constant 0 : i32
    return %arg0, %c0_i32 : i32, i32
  }
  func.func @transform_1(%arg0: i32) -> (i32, i32) {
    %c0_i32 = arith.constant 0 : i32
    %c0_i32_0 = arith.constant 0 : i32
    %c0_i32_1 = arith.constant 0 : i32
    return %c0_i32, %c0_i32_0 : i32, i32
  }
  func.func @transform_2(%arg0: i32) -> (i32, i32) {
    %c0_i32 = arith.constant 0 : i32
    %c0_i32_0 = arith.constant 0 : i32
    %c0_i32_1 = arith.constant 0 : i32
    return %c0_i32, %c0_i32_0 : i32, i32
  }
  func.func @transform_3(%arg0: i32) -> (i32, i32) {
    %c0_i32 = arith.constant 0 : i32
    %c0_i32_0 = arith.constant 0 : i32
    return %arg0, %c0_i32 : i32, i32
  }
}

</mosaic_0001>

<bundles_post_ra>
// kernel: self_attn_block.1
= control target key start
LH: loop header
LB: loop body
LE: loop exit
PB: predicated region body
PF: predicated region fallthrough
CT: control target
= control target key end

     0   :  { %v1590_v2 = vmov 0   ;;  %s1869_s0 = inlined_call_operand.vmem [shape: s32[64,1], index: 0, kind: input, shape index: {}]   ;;  %s1870_s1 = inlined_call_operand.vmem [shape: f32[128,32], index: 1, kind: input, shape index: {}]   ;;  %s1871_s2 = inlined_call_operand.vmem [shape: f32[64,64], index: 2, kind: input, shape index: {}]   ;;  %s1872_s3 = inlined_call_operand.hbm [shape: f32[16,32], index: 3, kind: output, shape index: {}]  }
   0x1   :  { %v19_v0 = vld [vmem:[%s1869_s0 + $0x10] sm:$0xff]  ;;  %v17_v1 = vld [vmem:[%s1869_s0] sm:$0xff]  ;;  %1529 = vset.pattern.permute.xlu1 %v1590_v2  ;;  %1528 = vset.pattern.permute.xlu0 %v1590_v2  ;;  %v20_v3 = vld [vmem:[%s1869_s0 + $0x18] sm:$0xff] }
   0x2   :  { %32 = vperm.xlu1 %1529, %v19_v0   ;;  %26 = vperm.xlu0 %1528, %v17_v1   ;;  %v18_v4 = vld [vmem:[%s1869_s0 + $0x8] sm:$0xff]  ;;  %v73_v5 = vld [vmem:[%s1870_s1] sm:$0xff]  ;;  %v75_v11 = vld [vmem:[%s1870_s1 + $0x10] sm:$0xff] }
   0x3   :  { %v74_v6 = vld [vmem:[%s1870_s1 + $0x8] sm:$0xff]  ;;  %v207_v7 = vld [vmem:[%s1870_s1 + $0x20] sm:$0xff]  ;;  %v76_v12 = vld [vmem:[%s1870_s1 + $0x18] sm:$0xff] }
   0x4   :  { %v208_v8 = vld [vmem:[%s1870_s1 + $0x28] sm:$0xff]  ;;  %v1433_v9 = vpack.c.bf16 %v74_v6, %v73_v5  ;;  %v209_v13 = vld [vmem:[%s1870_s1 + $0x30] sm:$0xff]  ;;  %v1437_v14 = vpack.c.bf16 %v76_v12, %v75_v11  ;;  %v210_v15 = vld [vmem:[%s1870_s1 + $0x38] sm:$0xff] }
   0x5   :  { %v1441_v10 = vpack.c.bf16 %v208_v8, %v207_v7 }
   0x6   :  { %8 = vsyncpa [#allocation3], 0  ;;  %35 = vperm.xlu1 %1529, %v20_v3   ;;  %29 = vperm.xlu0 %1528, %v18_v4   ;;  %v1445_v16 = vpack.c.bf16 %v210_v15, %v209_v13  ;;  %v22_v17 = vld [vmem:[%s1869_s0 + $0x28] sm:$0xff]  ;;  %v21_v18 = vld [vmem:[%s1869_s0 + $0x20] sm:$0xff]  ;;  %v15_v21 = vlaneseq  ;;  %vm77_vm0 = vcmask 261120   ;;  %v1591_v25 = vmov 0.0  }
   0x7   :  { %1434 = vmatprep.subr.bf16.mxu0 %v1433_v9  ;;  %1442 = vmatprep.subr.bf16.mxu1 %v1441_v10  ;;  %v24_v19 = vld [vmem:[%s1869_s0 + $0x38] sm:$0xff]  ;;  %v23_v20 = vld [vmem:[%s1869_s0 + $0x30] sm:$0xff]  ;;  %v1592_v33 = vmov 1.0|1.0   ;;  %vm1699_vm13 = vmpackc.low %vm77_vm0, %vm77_vm0  ;;  %vm477_vm14 = vcmask 523264  }
   0x8   :  { %1436 = vmatpush3.bf16.msra.mxu0 %v1433_v9  ;;  %1444 = vmatpush3.bf16.msra.mxu1 %v1441_v10  ;;  %v16_v22 = vand.u32 127, %v15_v21  ;;  %v1730_v63 = vld [vmem:[%s1871_s2 + $0x8] sm:$0xff]  ;;  %v1735_v0 = vld [vmem:[%s1871_s2] sm:$0xff]  ;;  %v318_v6 = vld [vmem:[%s1871_s2 + $0x10] sm:$0xff] }
   0x9   :  { %1438 = vmatprep.subr.bf16.mxu0 %v1437_v14  ;;  %1446 = vmatprep.subr.bf16.mxu1 %v1445_v16  ;;  %v319_v9 = vld [vmem:[%s1871_s2 + $0x18] sm:$0xff]  ;;  %v320_v12 = vld [vmem:[%s1871_s2 + $0x20] sm:$0xff]  ;;  %vm939_vm15 = vcmp.lt.f32.partialorder %v1735_v0, -1.0 }
   0xa   :  { %41 = vperm.xlu1 %1529, %v22_v17   ;;  %38 = vperm.xlu0 %1528, %v21_v18  }
   0xc   :  { %1440 = vmatpush3.bf16.msra.mxu0 %v1437_v14  ;;  %1448 = vmatpush3.bf16.msra.mxu1 %v1445_v16  ;;  %v321_v16 = vld [vmem:[%s1871_s2 + $0x28] sm:$0xff] }
   0xe   :  { %47 = vperm.xlu1 %1529, %v24_v19   ;;  %44 = vperm.xlu0 %1528, %v23_v20   ;;  %v322_v19 = vld [vmem:[%s1871_s2 + $0x30] sm:$0xff] }
  0x81   :  { %v33_v23 = vpop.permute.xlu1 %32  ;;  %v27_v24 = vpop.permute.xlu0 %26 }
  0x82   :  { %vm49_vm1 = vcmp.eq.s32.totalorder %v16_v22, %v27_v24  ;;  %vm51_vm2 = vcmp.eq.s32.totalorder %v16_v22, %v33_v23  ;;  %v323_v24 = vld [vmem:[%s1871_s2 + $0x38] sm:$0xff] }
  0x83   :  { %v1665_v26 = vsel %vm49_vm1, 1.0, %v1591_v25  ;;  %v1142_v29 = vsel %vm51_vm2, 1.0, %v1591_v25 }
  0x84   :  { %1300 = vmatprep.mubr.msk.f32.mxu0 %vm77_vm0, %v1665_v26  ;;  %1320 = vmatprep.mubr.msk.f32.mxu1 %vm77_vm0, %v1665_v26 }
  0x85   :  { %v36_v27 = vpop.permute.xlu1 %35  ;;  %v30_v28 = vpop.permute.xlu0 %29 }
  0x86   :  { %vm52_vm3 = vcmp.eq.s32.totalorder %v16_v22, %v36_v27  ;;  %vm50_vm4 = vcmp.eq.s32.totalorder %v16_v22, %v30_v28 }
  0x87   :  { %vm1671_vm5 = vmpackc.low %vm52_vm3, %vm51_vm2  ;;  %v1675_v31 = vsel %vm50_vm4, 1.0, %v1591_v25  ;;  %v1143_v32 = vsel %vm52_vm3, 1.0, %v1591_v25  ;;  %vm940_vm2 = vcmp.lt.f32.partialorder %v1730_v63, -1.0 }
  0x88   :  { %vm1473_vm6 = vmpackc.low %vm50_vm4, %vm49_vm1  ;;  %1301 = vmatmul.mubr.msk.f32.vlgmr.msra.gmra.mrb[0].mxu0 %vm77_vm0, %v1675_v31  ;;  %1321 = vmatmul.mubr.msk.f32.vlgmr.msra.gmra.mrb[0].mxu1 %vm77_vm0, %v1675_v31  ;;  %vm943_vm1 = vcmask 130048  }
  0x89   :  { %1474 = vmatprep.subr.msk.bf16.mxu1 %vm1473_vm6, %v1592_v33  ;;  %v42_v34 = vpop.permute.xlu1 %41  ;;  %v39_v35 = vpop.permute.xlu0 %38  ;;  %1303 = vmatprep.mubr.msk.f32.mxu0 %vm77_vm0, %v1142_v29 }
  0x8a   :  { %vm53_vm7 = vcmp.eq.s32.totalorder %v16_v22, %v39_v35  ;;  %1476 = vmatpush3.bf16.msk.msra.mxu1 %vm1473_vm6, %v1592_v33  ;;  %1323 = vmatprep.mubr.msk.f32.mxu1 %vm77_vm0, %v1142_v29  ;;  %vm54_vm8 = vcmp.eq.s32.totalorder %v16_v22, %v42_v34 }
  0x8b   :  { %v1144_v36 = vsel %vm53_vm7, 1.0, %v1591_v25  ;;  %1478 = vmatprep.subr.msk.bf16.mxu1 %vm1671_vm5, %v1592_v33  ;;  %vm1481_vm9 = vmpackc.low %vm54_vm8, %vm53_vm7  ;;  %v1145_v39 = vsel %vm54_vm8, 1.0, %v1591_v25 }
  0x8c   :  { %1304 = vmatmul.mubr.msk.f32.gmra.mrb[2].mxu0 %vm77_vm0, %v1143_v32  ;;  %1324 = vmatmul.mubr.msk.f32.gmra.mrb[2].mxu1 %vm77_vm0, %v1143_v32 }
  0x8d   :  { %v48_v37 = vpop.permute.xlu1 %47  ;;  %v45_v38 = vpop.permute.xlu0 %44  ;;  %1306 = vmatprep.mubr.msk.f32.mxu0 %vm77_vm0, %v1144_v36  ;;  %1326 = vmatprep.mubr.msk.f32.mxu1 %vm77_vm0, %v1144_v36 }
  0x8e   :  { %vm55_vm10 = vcmp.eq.s32.totalorder %v16_v22, %v45_v38  ;;  %1480 = vmatpush3.bf16.msk.msra.mxu1 %vm1671_vm5, %v1592_v33  ;;  %vm56_vm11 = vcmp.eq.s32.totalorder %v16_v22, %v48_v37 }
  0x8f   :  { %v1146_v40 = vsel %vm55_vm10, 1.0, %v1591_v25  ;;  %1482 = vmatprep.subr.msk.bf16.mxu1 %vm1481_vm9, %v1592_v33  ;;  %vm1485_vm12 = vmpackc.low %vm56_vm11, %vm55_vm10  ;;  %v1147_v41 = vsel %vm56_vm11, 1.0, %v1591_v25 }
  0x90   :  { %1307 = vmatmul.mubr.msk.f32.gmra.mrb[4].mxu0 %vm77_vm0, %v1145_v39  ;;  %1327 = vmatmul.mubr.msk.f32.gmra.mrb[4].mxu1 %vm77_vm0, %v1145_v39 }
  0x91   :  { %1309 = vmatprep.mubr.msk.f32.mxu0 %vm77_vm0, %v1146_v40  ;;  %1329 = vmatprep.mubr.msk.f32.mxu1 %vm77_vm0, %v1146_v40 }
  0x92   :  { %1484 = vmatpush3.bf16.msk.msra.mxu1 %vm1481_vm9, %v1592_v33 }
  0x93   :  { %1486 = vmatprep.subr.msk.bf16.mxu1 %vm1485_vm12, %v1592_v33 }
  0x94   :  { %1310 = vmatmul.mubr.msk.f32.gmra.mrb[6].mxu0 %vm77_vm0, %v1147_v41  ;;  %1330 = vmatmul.mubr.msk.f32.gmra.mrb[6].mxu1 %vm77_vm0, %v1147_v41 }
  0x96   :  { %1488 = vmatpush3.bf16.msk.msra.mxu1 %vm1485_vm12, %v1592_v33 }
 0x15b   :  { %v1302_v42 = vpop.f32.mrb[0].mxu0  ;;  %v1322_v43 = vpop.f32.mrb[0].mxu1 }
 0x15c   :  { %v168_v44 = vpop.f32.mrb[1].mxu0  ;;  %v277_v45 = vpop.f32.mrb[1].mxu1 }
 0x15d   :  { %v1449_v47 = vpack.c.bf16 %v1322_v43, %v277_v45  ;;  %1348 = vmatprep.mubr.msk.f32.mxu0 %vm77_vm0, %v168_v44 }
 0x15f   :  { %v1305_v48 = vpop.f32.mrb[2].mxu0  ;;  %v1325_v49 = vpop.f32.mrb[2].mxu1  ;;  %1451 = vmatprep.subr.msk.bf16.mxu0 %vm1699_vm13, %v1449_v47 }
 0x160   :  { %v178_v50 = vpop.f32.mrb[3].mxu0  ;;  %v287_v51 = vpop.f32.mrb[3].mxu1  ;;  %1454 = vmatpush3.bf16.xpose.msk.msra.mxu0 %vm1699_vm13, %v1449_v47 }
 0x161   :  { %v1455_v52 = vpack.c.bf16 %v1325_v49, %v287_v51 }
 0x163   :  { %v1308_v53 = vpop.f32.mrb[4].mxu0  ;;  %v1328_v54 = vpop.f32.mrb[4].mxu1  ;;  %1457 = vmatprep.subr.msk.bf16.mxu0 %vm1699_vm13, %v1455_v52 }
 0x164   :  { %v188_v55 = vpop.f32.mrb[5].mxu0  ;;  %v297_v56 = vpop.f32.mrb[5].mxu1 }
 0x165   :  { %v1461_v57 = vpack.c.bf16 %v1328_v54, %v297_v56 }
 0x167   :  { %v1311_v58 = vpop.f32.mrb[6].mxu0  ;;  %v1331_v59 = vpop.f32.mrb[6].mxu1 }
 0x168   :  { %v198_v60 = vpop.f32.mrb[7].mxu0  ;;  %v307_v61 = vpop.f32.mrb[7].mxu1  ;;  %1460 = vmatpush3.bf16.xpose.msk.msra.mxu0 %vm1699_vm13, %v1455_v52 }
 0x169   :  { %v1467_v62 = vpack.c.bf16 %v1331_v59, %v307_v61  ;;  %1463 = vmatprep.subr.msk.bf16.mxu0 %vm1699_vm13, %v1461_v57 }
 0x170   :  { %1466 = vmatpush3.bf16.xpose.msk.msra.mxu0 %vm1699_vm13, %v1461_v57 }
 0x171   :  { %1469 = vmatprep.subr.msk.bf16.mxu0 %vm1699_vm13, %v1467_v62 }
 0x178   :  { %1472 = vmatpush3.bf16.xpose.msk.msra.mxu0 %vm1699_vm13, %v1467_v62 }
 0x17f   :  { %1349 = vmatmul.mubr.msk.f32.vlgmr.msra.gmra.mrb[8].mxu0 %vm77_vm0, %v1302_v42 }
 0x180   :  { %1351 = vmatprep.mubr.msk.f32.mxu0 %vm77_vm0, %v178_v50 }
 0x183   :  { %1352 = vmatmul.mubr.msk.f32.gmra.mrb[10].mxu0 %vm77_vm0, %v1305_v48 }
 0x184   :  { %1354 = vmatprep.mubr.msk.f32.mxu0 %vm77_vm0, %v188_v55 }
 0x187   :  { %1355 = vmatmul.mubr.msk.f32.gmra.mrb[12].mxu0 %vm77_vm0, %v1308_v53 }
 0x188   :  { %1357 = vmatprep.mubr.msk.f32.mxu0 %vm77_vm0, %v198_v60 }
 0x18b   :  { %1358 = vmatmul.mubr.msk.f32.gmra.mrb[14].mxu0 %vm77_vm0, %v1311_v58 }
 0x252   :  { %v1350_v1 = vpop.f32.mrb[8].mxu0 }
 0x253   :  { %v444_v2 = vadd.f32 %v1350_v1, %v1730_v63  ;;  %v438_v3 = vpop.f32.mrb[9].mxu0 }
 0x254   :  { %v439_v4 = vadd.f32 %v438_v3, %v1735_v0 }
 0x255   :  { %v481_v5 = vsel %vm477_vm14, %v444_v2, -inf }
 0x256   :  { %482 = vmax.xlane.f32.xlu1 %v481_v5  ;;  %v1353_v7 = vpop.f32.mrb[10].mxu0  ;;  %v478_v8 = vsel %vm477_vm14, %v439_v4, -inf }
 0x257   :  { %v448_v10 = vpop.f32.mrb[11].mxu0  ;;  %479 = vmax.xlane.f32.xlu0 %v478_v8  ;;  %v454_v13 = vadd.f32 %v1353_v7, %v319_v9 }
 0x258   :  { %v449_v11 = vadd.f32 %v448_v10, %v318_v6 }
 0x259   :  { %v487_v23 = vsel %vm477_vm14, %v454_v13, -inf }
 0x25a   :  { %v1356_v14 = vpop.f32.mrb[12].mxu0  ;;  %v484_v15 = vsel %vm477_vm14, %v449_v11, -inf }
 0x25b   :  { %v458_v17 = vpop.f32.mrb[13].mxu0  ;;  %485 = vmax.xlane.f32.xlu0 %v484_v15  ;;  %v464_v20 = vadd.f32 %v1356_v14, %v321_v16 }
 0x25c   :  { %v459_v18 = vadd.f32 %v458_v17, %v320_v12  ;;  %v720_v12 = vld [vmem:[%s1870_s1 + $0x48] sm:$0xff] }
 0x25d   :  { %v493_v30 = vsel %vm477_vm14, %v464_v20, -inf }
 0x25e   :  { %v1359_v21 = vpop.f32.mrb[14].mxu0  ;;  %v490_v22 = vsel %vm477_vm14, %v459_v18, -inf }
 0x25f   :  { %v468_v25 = vpop.f32.mrb[15].mxu0  ;;  %491 = vmax.xlane.f32.xlu1 %v490_v22  ;;  %488 = vmax.xlane.f32.xlu0 %v487_v23  ;;  %v474_v28 = vadd.f32 %v1359_v21, %v323_v24 }
 0x260   :  { %v469_v27 = vadd.f32 %v468_v25, %v322_v19 }
 0x261   :  { %v499_v32 = vsel %vm477_vm14, %v474_v28, -inf }
 0x262   :  { %v496_v29 = vsel %vm477_vm14, %v469_v27, -inf }
 0x263   :  { %497 = vmax.xlane.f32.xlu1 %v496_v29  ;;  %494 = vmax.xlane.f32.xlu0 %v493_v30 }
 0x267   :  { %500 = vmax.xlane.f32.xlu0 %v499_v32 }
 0x2e3   :  { %v483_v33 = vpop.xlane.xlu1 %482 }
 0x2e4   :  { %v503_v34 = vsub.f32 %v444_v2, %v483_v33  ;;  %v480_v35 = vpop.xlane.xlu0 %479  ;;  %v721_v33 = vld [vmem:[%s1870_s1 + $0x50] sm:$0xff] }
 0x2e5   :  { %v502_v36 = vsub.f32 %v439_v4, %v480_v35 }
 0x2e6   :  { %v512_v37 = vmul.f32 1.442695, %v503_v34  ;;  %v722_v34 = vld [vmem:[%s1870_s1 + $0x58] sm:$0xff] }
 0x2e7   :  { %v510_v38 = vmul.f32 1.442695, %v502_v36 }
 0x2e8   :  { %1530 = vpow2.f32 %v512_v37  ;;  %v486_v39 = vpop.xlane.xlu0 %485 }
 0x2e9   :  { %1532 = vpow2.f32 %v510_v38  ;;  %v504_v40 = vsub.f32 %v449_v11, %v486_v39  ;;  %v719_v11 = vld [vmem:[%s1870_s1 + $0x40] sm:$0xff] }
 0x2eb   :  { %v514_v41 = vmul.f32 1.442695, %v504_v40  ;;  %v1493_v40 = vpack.c.bf16 %v722_v34, %v721_v33 }
 0x2ec   :  { %v492_v42 = vpop.xlane.xlu1 %491  ;;  %v489_v43 = vpop.xlane.xlu0 %488 }
 0x2ed   :  { %1534 = vpow2.f32 %v514_v41  ;;  %v506_v44 = vsub.f32 %v459_v18, %v492_v42  ;;  %v505_v45 = vsub.f32 %v454_v13, %v489_v43  ;;  %v1489_v13 = vpack.c.bf16 %v720_v12, %v719_v11 }
 0x2ef   :  { %v518_v46 = vmul.f32 1.442695, %v506_v44  ;;  %v516_v47 = vmul.f32 1.442695, %v505_v45  ;;  %1490 = vmatprep.subr.bf16.mxu1 %v1489_v13 }
 0x2f0   :  { %v498_v48 = vpop.xlane.xlu1 %497  ;;  %v495_v49 = vpop.xlane.xlu0 %494 }
 0x2f1   :  { %1536 = vpow2.f32 %v518_v46  ;;  %v508_v50 = vsub.f32 %v469_v27, %v498_v48  ;;  %v507_v51 = vsub.f32 %v464_v20, %v495_v49 }
 0x2f2   :  { %v1765_v52 = vpop.eup %1530  ;;  %1538 = vpow2.f32 %v516_v47 }
 0x2f3   :  { %v1533_v53 = vpop.eup %1532  ;;  %v522_v54 = vmul.f32 1.442695, %v508_v50  ;;  %v520_v55 = vmul.f32 1.442695, %v507_v51  ;;  %v529_v56 = vsel %vm477_vm14, %v1765_v52, 0.0 }
 0x2f4   :  { %530 = vadd.xlane.f32.xlu0 %v529_v56  ;;  %v501_v57 = vpop.xlane.xlu0 %500  ;;  %v526_v58 = vsel %vm477_vm14, %v1533_v53, 0.0 }
 0x2f5   :  { %1540 = vpow2.f32 %v522_v54  ;;  %v509_v59 = vsub.f32 %v474_v28, %v501_v57  ;;  %527 = vadd.xlane.f32.xlu1 %v526_v58 }
 0x2f6   :  { %1542 = vpow2.f32 %v520_v55 }
 0x2f7   :  { %v1770_v60 = vpop.eup %1534  ;;  %v524_v61 = vmul.f32 1.442695, %v509_v59 }
 0x2f8   :  { %v532_v62 = vsel %vm477_vm14, %v1770_v60, 0.0 }
 0x2f9   :  { %1544 = vpow2.f32 %v524_v61  ;;  %533 = vadd.xlane.f32.xlu1 %v532_v62 }
 0x2fb   :  { %v1774_v1 = vpop.eup %1536 }
 0x2fc   :  { %v1776_v2 = vpop.eup %1538  ;;  %v538_v3 = vsel %vm477_vm14, %v1774_v1, 0.0 }
 0x2fd   :  { %539 = vadd.xlane.f32.xlu1 %v538_v3  ;;  %v535_v4 = vsel %vm477_vm14, %v1776_v2, 0.0 }
 0x2fe   :  { %536 = vadd.xlane.f32.xlu0 %v535_v4 }
 0x2ff   :  { %v1782_v5 = vpop.eup %1540 }
 0x300   :  { %v1784_v6 = vpop.eup %1542  ;;  %v544_v7 = vsel %vm477_vm14, %v1782_v5, 0.0 }
 0x301   :  { %545 = vadd.xlane.f32.xlu1 %v544_v7  ;;  %v541_v8 = vsel %vm477_vm14, %v1784_v6, 0.0 }
 0x302   :  { %542 = vadd.xlane.f32.xlu0 %v541_v8 }
 0x303   :  { %v1790_v9 = vpop.eup %1544 }
 0x304   :  { %v547_v10 = vsel %vm477_vm14, %v1790_v9, 0.0 }
 0x306   :  { %548 = vadd.xlane.f32.xlu0 %v547_v10 }
 0x381   :  { %v531_v14 = vpop.xlane.xlu0 %530 }
 0x382   :  { %1546 = vrcp.f32 %v531_v14  ;;  %v528_v15 = vpop.xlane.xlu1 %527 }
 0x383   :  { %1548 = vrcp.f32 %v528_v15 }
 0x386   :  { %v534_v16 = vpop.xlane.xlu1 %533 }
 0x387   :  { %1550 = vrcp.f32 %v534_v16 }
 0x38a   :  { %v540_v17 = vpop.xlane.xlu1 %539 }
 0x38b   :  { %1552 = vrcp.f32 %v540_v17  ;;  %v537_v18 = vpop.xlane.xlu0 %536 }
 0x38c   :  { %v1547_v19 = vpop.eup %1546  ;;  %1554 = vrcp.f32 %v537_v18 }
 0x38d   :  { %v1549_v20 = vpop.eup %1548  ;;  %v559_v21 = vmul.f32 %v1547_v19, %v531_v14 }
 0x38e   :  { %v558_v22 = vmul.f32 %v1549_v20, %v528_v15  ;;  %v546_v23 = vpop.xlane.xlu1 %545 }
 0x38f   :  { %v567_v24 = vsub.f32 2.0, %v559_v21  ;;  %1556 = vrcp.f32 %v546_v23  ;;  %v543_v25 = vpop.xlane.xlu0 %542 }
 0x390   :  { %v566_v27 = vsub.f32 2.0, %v558_v22  ;;  %1558 = vrcp.f32 %v543_v25 }
 0x391   :  { %v1551_v28 = vpop.eup %1550  ;;  %v575_v29 = vmul.f32 %v1547_v19, %v567_v24  ;;  %v1593_v19 = vmov 0.00390625  }
 0x392   :  { %v574_v30 = vmul.f32 %v1549_v20, %v566_v27  ;;  %v560_v32 = vmul.f32 %v1551_v28, %v534_v16  ;;  %v941_v20 = vsel %vm939_vm15, 0.0, %v1593_v19  ;;  %v942_v24 = vsel %vm940_vm2, 0.0, %v1593_v19 }
 0x393   :  { %v549_v35 = vpop.xlane.xlu0 %548  ;;  %v583_v39 = vmul.f32 %v1765_v52, %v575_v29  ;;  %1423 = vmatprep.mubr.msk.f32.mxu0 %vm943_vm1, %v941_v20 }
 0x394   :  { %v582_v36 = vmul.f32 %v1533_v53, %v574_v30  ;;  %v568_v37 = vsub.f32 2.0, %v560_v32  ;;  %1560 = vrcp.f32 %v549_v35 }
 0x395   :  { %v1553_v38 = vpop.eup %1552 }
 0x396   :  { %v1555_v41 = vpop.eup %1554  ;;  %v576_v42 = vmul.f32 %v1551_v28, %v568_v37  ;;  %v562_v43 = vmul.f32 %v1553_v38, %v540_v17  ;;  %1376 = vmatprep.mubr.msk.f32.mxu1 %vm477_vm14, %v582_v36 }
 0x397   :  { %v561_v44 = vmul.f32 %v1555_v41, %v537_v18  ;;  %1377 = vmatmul.mubr.msk.f32.vlgmr.msra.gmra.mrb[8].mxu1 %vm477_vm14, %v583_v39 }
 0x398   :  { %v584_v45 = vmul.f32 %v1770_v60, %v576_v42  ;;  %v570_v46 = vsub.f32 2.0, %v562_v43  ;;  %1492 = vmatpush3.bf16.msra.mxu1 %v1489_v13 }
 0x399   :  { %v1557_v47 = vpop.eup %1556  ;;  %v569_v48 = vsub.f32 2.0, %v561_v44  ;;  %1494 = vmatprep.subr.bf16.mxu1 %v1493_v40 }
 0x39a   :  { %v1559_v49 = vpop.eup %1558  ;;  %v578_v50 = vmul.f32 %v1553_v38, %v570_v46  ;;  %v564_v51 = vmul.f32 %v1557_v47, %v546_v23  ;;  %1379 = vmatprep.mubr.msk.f32.mxu1 %vm477_vm14, %v584_v45 }
 0x39b   :  { %v577_v52 = vmul.f32 %v1555_v41, %v569_v48  ;;  %v563_v53 = vmul.f32 %v1559_v49, %v543_v25 }
 0x39c   :  { %v586_v54 = vmul.f32 %v1774_v1, %v578_v50  ;;  %v572_v55 = vsub.f32 2.0, %v564_v51  ;;  %1496 = vmatpush3.bf16.msra.mxu1 %v1493_v40 }
 0x39d   :  { %v585_v56 = vmul.f32 %v1776_v2, %v577_v52  ;;  %v571_v57 = vsub.f32 2.0, %v563_v53  ;;  %v852_v2 = vld [vmem:[%s1870_s1 + $0x60] sm:$0xff] }
 0x39e   :  { %v1561_v58 = vpop.eup %1560  ;;  %v580_v59 = vmul.f32 %v1557_v47, %v572_v55 }
 0x39f   :  { %v579_v60 = vmul.f32 %v1559_v49, %v571_v57  ;;  %v565_v61 = vmul.f32 %v1561_v58, %v549_v35  ;;  %1380 = vmatmul.mubr.msk.f32.gmra.mrb[10].mxu1 %vm477_vm14, %v585_v56 }
 0x3a0   :  { %v588_v62 = vmul.f32 %v1782_v5, %v580_v59  ;;  %1382 = vmatprep.mubr.msk.f32.mxu1 %vm477_vm14, %v586_v54  ;;  %v853_v5 = vld [vmem:[%s1870_s1 + $0x68] sm:$0xff] }
 0x3a1   :  { %v587_v3 = vmul.f32 %v1784_v6, %v579_v60  ;;  %v573_v4 = vsub.f32 2.0, %v565_v61  ;;  %v1497_v8 = vpack.c.bf16 %v853_v5, %v852_v2  ;;  %v854_v6 = vld [vmem:[%s1870_s1 + $0x70] sm:$0xff] }
 0x3a3   :  { %v581_v7 = vmul.f32 %v1561_v58, %v573_v4  ;;  %1383 = vmatmul.mubr.msk.f32.gmra.mrb[12].mxu1 %vm477_vm14, %v587_v3  ;;  %1498 = vmatprep.subr.bf16.mxu1 %v1497_v8 }
 0x3a4   :  { %1385 = vmatprep.mubr.msk.f32.mxu1 %vm477_vm14, %v588_v62 }
 0x3a5   :  { %v589_v1 = vmul.f32 %v1790_v9, %v581_v7  ;;  %v855_v9 = vld [vmem:[%s1870_s1 + $0x78] sm:$0xff]  ;;  %s1594_s1 = smov [#allocation2]  }
 0x3a6   :  { %v1501_v12 = vpack.c.bf16 %v855_v9, %v854_v6  ;;  %s1129_s19 = sshll.u32 %s1594_s1, 4  ;;  %s1130_s19 = int_to_ptr.vmem [resolvable:$true] %s1129_s19 }
 0x3a7   :  { %1386 = vmatmul.mubr.msk.f32.gmra.mrb[14].mxu1 %vm477_vm14, %v589_v1  ;;  %s1566_s20 = scalar_lea.vmem %s1130_s19, 256  ;;  %p1571_p1 = scmp.lt.s32.totalorder %s1130_s19, %s1130_s19 }
 0x3a8   :  { %p1567_p0 = scmp.ne.s32.totalorder %s1130_s19, %s1566_s20  ;;  %p1572_p2 = scmp.lt.s32.totalorder %s1566_s20, %s1566_s20 }
 0x3aa   :  { %p1573_p3 = por %p1572_p2, %p1571_p1 }
 0x3ac   :  { %p1574_p4 = pnand %p1573_p3, %p1567_p0 }
 0x46a   :  { %v1378_v10 = vpop.f32.mrb[8].mxu1 }
 0x46b   :  { %v680_v11 = vpop.f32.mrb[9].mxu1 }
 0x46c   :  { %1396 = vmatprep.mubr.msk.f32.mxu1 %vm77_vm0, %v680_v11 }
 0x46d   :  { %1397 = vmatmul.mubr.msk.f32.vlgmr.msra.gmra.mrb[16].mxu1 %vm77_vm0, %v1378_v10 }
 0x46e   :  { %1500 = vmatpush3.bf16.msra.mxu1 %v1497_v8 }
 0x46f   :  { %1502 = vmatprep.subr.bf16.mxu1 %v1501_v12 }
 0x472   :  { %v1381_v13 = vpop.f32.mrb[10].mxu1  ;;  %1504 = vmatpush3.bf16.msra.mxu1 %v1501_v12 }
 0x473   :  { %v690_v14 = vpop.f32.mrb[11].mxu1 }
 0x474   :  { %1399 = vmatprep.mubr.msk.f32.mxu1 %vm77_vm0, %v690_v14 }
 0x475   :  { %1400 = vmatmul.mubr.msk.f32.gmra.mrb[16].mxu1 %vm77_vm0, %v1381_v13 }
 0x476   :  { %v1384_v15 = vpop.f32.mrb[12].mxu1 }
 0x477   :  { %v700_v16 = vpop.f32.mrb[13].mxu1 }
 0x478   :  { %1402 = vmatprep.mubr.msk.f32.mxu1 %vm77_vm0, %v700_v16 }
 0x47a   :  { %v1387_v17 = vpop.f32.mrb[14].mxu1 }
 0x47b   :  { %v710_v18 = vpop.f32.mrb[15].mxu1 }
 0x47d   :  { %1403 = vmatmul.mubr.msk.f32.gmra.mrb[16].mxu1 %vm77_vm0, %v1384_v15 }
 0x47e   :  { %1405 = vmatprep.mubr.msk.f32.mxu1 %vm77_vm0, %v710_v18 }
 0x485   :  { %1406 = vmatmul.mubr.msk.f32.gmra.mrb[16].mxu1 %vm77_vm0, %v1387_v17 }
 0x486   :  { %1416 = vmatprep.mubr.msk.f32.mxu1 %vm77_vm0, %v1665_v26 }
 0x48d   :  { %1417 = vmatmul.mubr.msk.f32.vlgmr.msra.gmra.mrb[16].mxu1 %vm77_vm0, %v1675_v31 }
 0x560   :  { %v1418_v21 = vpop.f32.mrb[16].mxu1 }
 0x561   :  { %v922_v22 = vpop.f32.mrb[17].mxu1 }
 0x562   :  { %v1505_v23 = vpack.c.bf16 %v1418_v21, %v922_v22 }
 0x564   :  { %1506 = vmatprep.subr.bf16.mxu0 %v1505_v23 }
 0x565   :  { %1508 = vmatpush3.bf16.msra.mxu0 %v1505_v23 }
 0x568   :  { %1424 = vmatmul.mubr.msk.f32.vlgmr.msra.gmra.mrb[16].mxu0 %vm943_vm1, %v942_v24 }
 0x569   :  { %1430 = vmatprep.mubr.msk.f32.mxu0 %vm943_vm1, %v941_v20 }
 0x63b   :  { %v1425_v26 = vpop.f32.mrb[16].mxu0 }
 0x63c   :  { %v1016_v31 = vpop.f32.mrb[17].mxu0  ;;  %v1028_v0 = vsel %vm77_vm0, %v1425_v26, 0.0 }
 0x63d   :  { %1029 = vadd.xlane.f32.xlu0 %v1028_v0  ;;  %v1025_v25 = vsel %vm77_vm0, %v1016_v31, 0.0 }
 0x63e   :  { %1026 = vadd.xlane.f32.xlu1 %v1025_v25 }
 0x6ca   :  { %v1030_v27 = vpop.xlane.xlu0 %1029 }
 0x6cb   :  { %v1032_v28 = vsub.f32 %v1418_v21, %v1030_v27  ;;  %v1027_v29 = vpop.xlane.xlu1 %1026 }
 0x6cc   :  { %v1031_v30 = vsub.f32 %v922_v22, %v1027_v29 }
 0x6cd   :  { %v1034_v63 = vmul.f32 %v1032_v28, %v1032_v28 }
 0x6ce   :  { %v1033_v32 = vmul.f32 %v1031_v30, %v1031_v30 }
 0x6d0   :  { %v1509_v33 = vpack.c.bf16 %v1034_v63, %v1033_v32 }
 0x6d2   :  { %1510 = vmatprep.subr.bf16.mxu0 %v1509_v33 }
 0x6d3   :  { %1512 = vmatpush3.bf16.msra.mxu0 %v1509_v33 }
 0x6d6   :  { %1431 = vmatmul.mubr.msk.f32.vlgmr.msra.gmra.mrb[18].mxu0 %vm943_vm1, %v942_v24 }
 0x7a9   :  { %v1432_v34 = vpop.f32.mrb[18].mxu0 }
 0x7aa   :  { %v1101_v35 = vpop.f32.mrb[19].mxu0  ;;  %v1113_v36 = vsel %vm77_vm0, %v1432_v34, 0.0 }
 0x7ab   :  { %1114 = vadd.xlane.f32.xlu0 %v1113_v36  ;;  %v1110_v37 = vsel %vm77_vm0, %v1101_v35, 0.0 }
 0x7ac   :  { %1111 = vadd.xlane.f32.xlu1 %v1110_v37 }
 0x838   :  { %v1115_v38 = vpop.xlane.xlu0 %1114 }
 0x839   :  { %v1117_v39 = vadd.f32 1e-05, %v1115_v38  ;;  %v1112_v40 = vpop.xlane.xlu1 %1111 }
 0x83a   :  { %v1116_v41 = vadd.f32 1e-05, %v1112_v40 }
 0x83b   :  { %1562 = vrsqrt.f32 %v1117_v39 }
 0x83c   :  { %1564 = vrsqrt.f32 %v1116_v41 }
 0x845   :  { %v1563_v42 = vpop.eup %1562 }
 0x846   :  { %v1565_v43 = vpop.eup %1564  ;;  %v1121_v44 = vmul.f32 %v1563_v42, %v1032_v28 }
 0x847   :  { %v1120_v45 = vmul.f32 %v1565_v43, %v1031_v30 }
 0x848   :  { %1123 = vst.msk [vmem:[#allocation2 + $0x8] sm:$0xff] %vm77_vm0, %v1121_v44 }
 0x849   :  { %1122 = vst.msk [vmem:[#allocation2] sm:$0xff] %vm77_vm0, %v1120_v45 }
 0x84a   :  { %1577 = shalt.err (!%p1574_p4)
}
 0x84b   :  { %s1578_s23 = scalar_lea.hbm %s1872_s3, 256 }
 0x84c   :  { %p1579_p5 = scmp.ne.s32.totalorder %s1872_s3, %s1578_s23  ;;  %p1582_p6 = scmp.lt.u32.totalorder %s1578_s23, %s1872_s3 }
 0x84e   :  { %p1584_p7 = pnand %p1582_p6, %p1579_p5 }
 0x850   :  { %1587 = shalt.err (!%p1584_p7)
}
 0x851   :  { %s1595_s28 = smov 128   ;;  %s1596_s29 = smov 8  }
 0x852   :  { %1135 = dma.vmem_to_hbm [thread:$0]  %s1130_s19, 256, %s1872_s3, [#allocation3], %s1595_s28, %s1595_s28, %s1596_s29  }
 0x853   :  { %1588 = dma.done.wait [#allocation3], 256  }
 0x854   :  { %1589 = vsyncadd [#allocation3], 4294967040 }
 0x855   :  { %1139 = vsyncpa [#allocation3], 1 }

</bundles_post_ra>
